<compile_context>
chip_gen: v7x
topology: tpu7x:2x2x1
jax: 0.10.0
libtpu: 0.0.40
codegen_flags: <defaults>
</compile_context>

<pallas_src>
import functools

import jax
import jax.numpy as jnp
import numpy as np
from jax.experimental import pallas as pl
from jax.experimental.pallas import tpu as pltpu


def _round_up(x, m):
    return ((x + m - 1) // m) * m


def _pick_pixel_tile(P, cap=2048, min_tiles=1):
    """Largest multiple-of-128 divisor of P that is <= cap, preferring choices
    that leave at least `min_tiles` pixel tiles (for v7x core parallelism)."""
    cands = [d for d in range(128, min(cap, P) + 1, 128) if P % d == 0]
    if not cands:
        return P
    for tp in reversed(cands):
        if P // tp >= min_tiles:
            return tp
    return cands[0]


def _pixor_scatter_kernel(kstart_ref, kcount_ref, glin_ref, vals_ref, out_ref,
                          *, P, TP, NT):
    """Grid = (batch, pixel_tile).

    kstart_ref : (B*NT,)     int32 SMEM  first sorted-voxel chunk for this tile
    kcount_ref : (B*NT,)     int32 SMEM  number of chunks for this tile
    glin_ref   : (NB, TN, 1) int32 VMEM  sorted global pixel index, column form
    vals_ref   : (NB, 3, TN) bf16  VMEM  rows = [occupancy, intensity_hi, intensity_lo]
    out_ref    : (2, TP)     f32         row 0 = occupancy, row 1 = intensity
    """
    b = pl.program_id(0)
    t = pl.program_id(1)
    tile = b * NT + t

    base = b * P + t * TP
    pix = base + jax.lax.broadcasted_iota(jnp.int32, (1, TP), 1)     # (1, TP)

    ks = kstart_ref[tile]
    kc = kcount_ref[tile]

    def body(i, acc):
        k = ks + i
        # (TN, 1) == (1, TP) -> one-hot scatter matrix, bf16 (exact 0/1).
        match = (glin_ref[k] == pix).astype(jnp.bfloat16)            # (TN, TP)
        # Fused scatter-reduce on the bf16 MXU with f32 accumulation:
        #   row 0: #voxels hitting each pixel, rows 1+2: intensity hi/lo sums.
        return acc + jnp.dot(vals_ref[k], match,
                             preferred_element_type=jnp.float32)     # (3, TP)

    acc = jax.lax.fori_loop(0, kc, body, jnp.zeros((3, TP), jnp.float32))

    out_ref[0:1, :] = jnp.minimum(acc[0:1, :], 1.0)                  # occupancy
    out_ref[1:2, :] = acc[1:2, :] + acc[2:3, :]                      # intensity (hi+lo)


def pixor_feature_layer(vox_feats, num_points, coords, batch_size,
                        voxel_feature_shape):
    """JAX/Pallas equivalent of PIXORFeatureLayer.forward."""
    del num_points  # torch only uses ones_like(num_points) -> constant 1.0 occupancy
    C = int(voxel_feature_shape[1])
    ny = int(voxel_feature_shape[2])
    nx = int(voxel_feature_shape[3])
    B = int(batch_size)
    P = ny * nx
    N = int(vox_feats.shape[0])

    if B * P >= 2 ** 31:
        raise ValueError("batch_size * ny * nx must fit in int32 for glin indexing")

    coords = coords.astype(jnp.int32)
    # Intensity = mean over points of the LAST feature (torch: mean(dim=1)[:, -1]).
    intensity = jnp.mean(vox_feats[:, :, -1].astype(jnp.float32), axis=1)   # (N,)
    glin = coords[:, 0] * P + coords[:, 2] * nx + coords[:, 3]              # (N,)

    # Sort voxels by global pixel index so every pixel tile only needs a small
    # contiguous range of voxel chunks.
    order = jnp.argsort(glin)
    glin_s = glin[order]
    int_s = intensity[order]

    TP = _pick_pixel_tile(P, cap=2048, min_tiles=2 if B == 1 else 1)
    NT = P // TP
    TN = min(_round_up(max(N, 1), 8), 512)
    N_pad = _round_up(max(N, 1), TN)
    NB = N_pad // TN

    pad = N_pad - N
    sentinel = B * P                       # sorts after every real voxel, hits no pixel
    glin_s = jnp.pad(glin_s, (0, pad), constant_values=sentinel)
    int_s = jnp.pad(int_s, (0, pad))

    # Per-(batch, pixel-tile) chunk ranges for the scalar-prefetch tables.
    bounds = jnp.arange(B * NT + 1, dtype=jnp.int32) * TP                   # tile glin bounds
    vpos = jnp.searchsorted(glin_s, bounds, side="left").astype(jnp.int32)  # (B*NT+1,)
    kstart = vpos[:-1] // TN
    kcount = (vpos[1:] + TN - 1) // TN - kstart                             # >= 0

    # Voxel value rows: occupancy (exact in bf16) + intensity split into bf16
    # hi+lo so the bf16 MXU path keeps ~f32 accuracy on channel C.
    hi = int_s.astype(jnp.bfloat16)
    lo = (int_s - hi.astype(jnp.float32)).astype(jnp.bfloat16)
    occ = jnp.ones_like(hi)
    vals = jnp.stack([occ, hi, lo], axis=0)                                 # (3, N_pad)
    vals = vals.reshape(3, NB, TN).transpose(1, 0, 2)                       # (NB, 3, TN)
    glin_cols = glin_s.reshape(NB, TN, 1)                                   # (NB, TN, 1)

    # TODO(synk): for very large N (>~5e4 voxels) stream glin chunks via manual
    # DMA instead of keeping the lane-padded (NB, TN, 1) column table resident
    # in VMEM (~512 B/voxel once tiled); vals stays cheap (~16 B/voxel).
    vmem_need = (2 * NB * TN * 128 * 4      # glin columns (lane-padded), 2 buffers
                 + 2 * NB * 8 * TN * 2      # vals rows (sublane-padded), 2 buffers
                 + 4 * TN * TP * 2          # bf16 match temporaries
                 + 8 * TP * 4 * 4           # accumulator + output blocks
                 + (1 << 20))               # slack
    vmem_limit = int(min(max(vmem_need, 32 << 20), 64 << 20))

    kernel = functools.partial(_pixor_scatter_kernel, P=P, TP=TP, NT=NT)

    out2 = pl.pallas_call(
        kernel,
        out_shape=jax.ShapeDtypeStruct((B, 2, P), jnp.float32),
        grid_spec=pltpu.PrefetchScalarGridSpec(
            num_scalar_prefetch=2,
            grid=(B, NT),
            in_specs=[
                # Constant index maps: the sorted voxel tables are copied to
                # VMEM once and reused by every grid step (no per-step re-DMA).
                pl.BlockSpec((NB, TN, 1), lambda b, t, ks, kc: (0, 0, 0)),
                pl.BlockSpec((NB, 3, TN), lambda b, t, ks, kc: (0, 0, 0)),
            ],
            out_specs=pl.BlockSpec((None, 2, TP), lambda b, t, ks, kc: (b, 0, t)),
        ),
        compiler_params=pltpu.CompilerParams(
            dimension_semantics=("parallel", "parallel"),
            vmem_limit_bytes=vmem_limit),
    )(kstart, kcount, glin_cols, vals)

    # Broadcast the single occupancy channel to the C identical channels in XLA
    # (cheaper than writing nch channels from the kernel).
    occ_c = jnp.broadcast_to(out2[:, 0:1, :], (B, C, P))
    canvas = jnp.concatenate([occ_c, out2[:, 1:2, :]], axis=1)              # (B, C+1, P)
    return canvas.reshape(B, C + 1, ny, nx)


def _reference(vox_feats, coords, batch_size, C, ny, nx):
    """Pure-JAX reference mirroring the PyTorch forward."""
    nch = C + 1
    P = ny * nx
    intensity = vox_feats.mean(axis=1)[:, -1]                    # (N,)
    lin = coords[:, 2] * nx + coords[:, 3]
    b = coords[:, 0]
    canvas = jnp.zeros((batch_size, nch, P), jnp.float32)
    canvas = canvas.at[b[:, None], jnp.arange(C)[None, :], lin[:, None]].set(1.0)
    canvas = canvas.at[b, C, lin].set(intensity)
    return canvas.reshape(batch_size, nch, ny, nx)


if __name__ == "__main__":
    # small, deterministic synthetic problem
    batch_size = 2
    C, ny, nx = 4, 16, 16          # -> nchannels = 5
    voxel_feature_shape = [1, C, ny, nx]
    N, T, F = 32, 8, 5             # 32 voxels, 8 points each, 5 features

    key = jax.random.PRNGKey(0)
    k_coord, k_feat = jax.random.split(key)

    # unique (batch, y, x) voxel coordinates (matches real voxelizer output)
    total = batch_size * ny * nx
    flat = jax.random.permutation(k_coord, total)[:N]
    b_ids = flat // (ny * nx)
    rem = flat % (ny * nx)
    ys = rem // nx
    xs = rem % nx
    coords = jnp.stack(
        [b_ids, jnp.zeros_like(b_ids), ys, xs], axis=1).astype(jnp.int32)   # (N, 4)

    vox_feats = jax.random.uniform(k_feat, (N, T, F), dtype=jnp.float32)
    num_points = jnp.full((N,), T, dtype=jnp.int32)

    out = pixor_feature_layer(vox_feats, num_points, coords, batch_size,
                              voxel_feature_shape)
    out = jax.block_until_ready(out)

    ref = _reference(vox_feats, coords, batch_size, C, ny, nx)

    assert out.shape == (batch_size, C + 1, ny, nx), out.shape
    # occupancy channels are exact; intensity carries a <=1e-5 bf16 hi/lo split error
    assert np.allclose(np.asarray(out), np.asarray(ref), atol=1e-4), \
        "Pallas output does not match reference"
    print("KERNEL_OK")
</pallas_src>

<mosaic_0001>
module attributes {stable_mosaic.version = 11 : i64} {
  func.func @_pixor_scatter_kernel(%arg0: i32, %arg1: i32, %arg2: memref<2xi32, #tpu.memory_space<smem>>, %arg3: memref<2xi32, #tpu.memory_space<smem>>, %arg4: memref<1x32x1xi32, #tpu.memory_space<vmem>>, %arg5: memref<1x3x32xbf16, #tpu.memory_space<vmem>>, %arg6: memref<1x2x256xf32, #tpu.memory_space<vmem>>) attributes {dimension_semantics = [#tpu.dimension_semantics<parallel>, #tpu.dimension_semantics<parallel>], iteration_bounds = array<i64: 2, 1>, scalar_prefetch = 2 : i64, scratch_operands = 0 : i64, tpu.core_type = #tpu.core_type<tc>, window_params = [{pipeline_mode = #tpu.pipeline_mode<synchronous>, transform_indices = @transform_0, window_bounds = array<i64: 1, 32, 1>}, {pipeline_mode = #tpu.pipeline_mode<synchronous>, transform_indices = @transform_1, window_bounds = array<i64: 1, 3, 32>}, {transform_indices = @transform_2, window_bounds = array<i64: 1, 2, 256>}]} {
    %c1_i32 = arith.constant 1 : i32
    %0 = arith.muli %arg0, %c1_i32 : i32
    %1 = arith.addi %0, %arg1 : i32
    %c256_i32 = arith.constant 256 : i32
    %2 = arith.muli %arg0, %c256_i32 : i32
    %c256_i32_0 = arith.constant 256 : i32
    %3 = arith.muli %arg1, %c256_i32_0 : i32
    %4 = arith.addi %2, %3 : i32
    %5 = tpu.iota {dimensions = array<i32: 1>} : vector<1x256xi32>
    %6 = vector.broadcast %4 : i32 to vector<1x256xi32>
    %7 = arith.addi %6, %5 : vector<1x256xi32>
    %8 = arith.index_cast %1 : i32 to index
    %9 = memref.load %arg2[%8] : memref<2xi32, #tpu.memory_space<smem>>
    %10 = arith.index_cast %1 : i32 to index
    %11 = memref.load %arg3[%10] : memref<2xi32, #tpu.memory_space<smem>>
    %cst = arith.constant 0.000000e+00 : f32
    %12 = vector.broadcast %cst : f32 to vector<3x256xf32>
    %c0_i32 = arith.constant 0 : i32
    %13 = arith.subi %11, %c0_i32 : i32
    %14 = arith.addi %c0_i32, %13 : i32
    %c1_i32_1 = arith.constant 1 : i32
    %15 = scf.for %arg7 = %c0_i32 to %14 step %c1_i32_1 iter_args(%arg8 = %12) -> (vector<3x256xf32>)  : i32 {
      %28 = arith.addi %9, %arg7 : i32
      %29 = arith.index_cast %28 : i32 to index
      %c0_7 = arith.constant 0 : index
      %c0_8 = arith.constant 0 : index
      %30 = vector.load %arg4[%29, %c0_7, %c0_8] : memref<1x32x1xi32, #tpu.memory_space<vmem>>, vector<1x32x1xi32>
      %31 = vector.shape_cast %30 : vector<1x32x1xi32> to vector<32x1xi32>
      %32 = vector.broadcast %31 : vector<32x1xi32> to vector<32x256xi32>
      %33 = vector.broadcast %7 : vector<1x256xi32> to vector<32x256xi32>
      %34 = arith.cmpi eq, %32, %33 : vector<32x256xi32>
      %35 = arith.extui %34 : vector<32x256xi1> to vector<32x256xi32>
      %36 = arith.sitofp %35 : vector<32x256xi32> to vector<32x256xf32>
      %37 = arith.truncf %36 : vector<32x256xf32> to vector<32x256xbf16>
      %38 = arith.index_cast %28 : i32 to index
      %c0_9 = arith.constant 0 : index
      %c0_10 = arith.constant 0 : index
      %39 = vector.load %arg5[%38, %c0_9, %c0_10] : memref<1x3x32xbf16, #tpu.memory_space<vmem>>, vector<1x3x32xbf16>
      %40 = vector.shape_cast %39 : vector<1x3x32xbf16> to vector<3x32xbf16>
      %cst_11 = arith.constant dense<0.000000e+00> : vector<3x256xf32>
      %41 = tpu.matmul %40, %37, %cst_11 {dimension_numbers = #tpu.dot_dimension_numbers<[1], [0], [0], [1], [0, 0, 1, 1], [], []>} : vector<3x32xbf16>, vector<32x256xbf16>, vector<3x256xf32> -> vector<3x256xf32>
      %42 = arith.addf %arg8, %41 : vector<3x256xf32>
      scf.yield %42 : vector<3x256xf32>
    }
    %16 = vector.extract_strided_slice %15 {offsets = [0, 0], sizes = [1, 256], strides = [1, 1]} : vector<3x256xf32> to vector<1x256xf32>
    %cst_2 = arith.constant 1.000000e+00 : f32
    %17 = vector.broadcast %cst_2 : f32 to vector<1x256xf32>
    %18 = arith.minimumf %16, %17 : vector<1x256xf32>
    %c0 = arith.constant 0 : index
    %c0_3 = arith.constant 0 : index
    %c0_4 = arith.constant 0 : index
    %19 = vector.load %arg6[%c0, %c0_3, %c0_4] : memref<1x2x256xf32, #tpu.memory_space<vmem>>, vector<1x1x256xf32>
    %20 = vector.shape_cast %19 : vector<1x1x256xf32> to vector<1x256xf32>
    %21 = vector.shape_cast %18 : vector<1x256xf32> to vector<1x1x256xf32>
    tpu.vector_store %arg6[%c0, %c0_3, %c0_4], %21 {strides = array<i32>} : memref<1x2x256xf32, #tpu.memory_space<vmem>>, vector<1x1x256xf32>,
    %22 = vector.extract_strided_slice %15 {offsets = [1, 0], sizes = [1, 256], strides = [1, 1]} : vector<3x256xf32> to vector<1x256xf32>
    %23 = vector.extract_strided_slice %15 {offsets = [2, 0], sizes = [1, 256], strides = [1, 1]} : vector<3x256xf32> to vector<1x256xf32>
    %24 = arith.addf %22, %23 : vector<1x256xf32>
    %c0_5 = arith.constant 0 : index
    %c1 = arith.constant 1 : index
    %c0_6 = arith.constant 0 : index
    %25 = vector.load %arg6[%c0_5, %c1, %c0_6] : memref<1x2x256xf32, #tpu.memory_space<vmem>>, vector<1x1x256xf32>
    %26 = vector.shape_cast %25 : vector<1x1x256xf32> to vector<1x256xf32>
    %27 = vector.shape_cast %24 : vector<1x256xf32> to vector<1x1x256xf32>
    tpu.vector_store %arg6[%c0_5, %c1, %c0_6], %27 {strides = array<i32>} : memref<1x2x256xf32, #tpu.memory_space<vmem>>, vector<1x1x256xf32>,
    return
  }
  func.func @transform_0(%arg0: i32, %arg1: i32, %arg2: memref<2xi32, #tpu.memory_space<smem>>, %arg3: memref<2xi32, #tpu.memory_space<smem>>) -> (i32, i32, i32) {
    %c0_i32 = arith.constant 0 : i32
    %c0_i32_0 = arith.constant 0 : i32
    %c0_i32_1 = arith.constant 0 : i32
    %c0_i32_2 = arith.constant 0 : i32
    return %c0_i32, %c0_i32_0, %c0_i32_1 : i32, i32, i32
  }
  func.func @transform_1(%arg0: i32, %arg1: i32, %arg2: memref<2xi32, #tpu.memory_space<smem>>, %arg3: memref<2xi32, #tpu.memory_space<smem>>) -> (i32, i32, i32) {
    %c0_i32 = arith.constant 0 : i32
    %c0_i32_0 = arith.constant 0 : i32
    %c0_i32_1 = arith.constant 0 : i32
    %c0_i32_2 = arith.constant 0 : i32
    return %c0_i32, %c0_i32_0, %c0_i32_1 : i32, i32, i32
  }
  func.func @transform_2(%arg0: i32, %arg1: i32, %arg2: memref<2xi32, #tpu.memory_space<smem>>, %arg3: memref<2xi32, #tpu.memory_space<smem>>) -> (i32, i32, i32) {
    %c0_i32 = arith.constant 0 : i32
    %c0_i32_0 = arith.constant 0 : i32
    return %arg0, %c0_i32, %arg1 : i32, i32, i32
  }
}

</mosaic_0001>

<bundles_post_ra>
// kernel: tpu_custom_call.1
= control target key start
LH: loop header
LB: loop body
LE: loop exit
PB: predicated region body
PF: predicated region fallthrough
CT: control target
= control target key end

     0   :  { %s901_s0 = inlined_call_operand.vmem [shape: s32[2], index: 0, kind: input, shape index: {}]   ;;  %s902_s2 = inlined_call_operand.vmem [shape: s32[1,32,1], index: 2, kind: input, shape index: {}]   ;;  %s903_s3 = inlined_call_operand.vmem [shape: bf16[1,3,32], index: 3, kind: input, shape index: {}]   ;;  %s904_s4 = inlined_call_operand.hbm [shape: f32[2,2,256], index: 4, kind: output, shape index: {}]   ;;  %s905_s1 = inlined_call_operand.vmem [shape: s32[2], index: 1, kind: input, shape index: {}]  }
   0x1   :  { %s9_s17 = sshll.u32 %s901_s0, 4  ;;  %s13_s20 = sshll.u32 %s905_s1, 4  ;;  %s10_s17 = int_to_ptr.vmem [resolvable:$true] %s9_s17  ;;  %s14_s20 = int_to_ptr.vmem [resolvable:$true] %s13_s20 }
   0x2   :  { %s548_s21 = scalar_lea.vmem %s10_s17, 16  ;;  %p553_p1 = scmp.lt.s32.totalorder %s10_s17, %s10_s17 }
   0x3   :  { %p549_p0 = scmp.ne.s32.totalorder %s10_s17, %s548_s21  ;;  %p554_p2 = scmp.lt.s32.totalorder %s548_s21, %s548_s21 }
   0x5   :  { %p555_p3 = por %p554_p2, %p553_p1 }
   0x7   :  { %p556_p4 = pnand %p555_p3, %p549_p0 }
   0x9   :  { %559 = shalt.err (!%p556_p4)  }
   0xa   :  { %s694_s22 = smov [#allocation3]   ;;  %s560_s23 = scalar_lea.vmem %s14_s20, 16 }
   0xb   :  { %12 = dma.vmem_to_smem %s10_s17, 16, %s694_s22, [#allocation2] }
   0xc   :  { %p561_p5 = scmp.ne.s32.totalorder %s14_s20, %s560_s23  ;;  %p565_p6 = scmp.lt.s32.totalorder %s14_s20, %s14_s20 }
   0xd   :  { %p566_p7 = scmp.lt.s32.totalorder %s560_s23, %s560_s23 }
   0xf   :  { %p567_p8 = por %p566_p7, %p565_p6 }
  0x11   :  { %p568_p9 = pnand %p567_p8, %p561_p5 }
  0x13   :  { %571 = shalt.err (!%p568_p9)  }
  0x14   :  { %s695_s0 = smov [#allocation4]  }
  0x15   :  { %16 = dma.vmem_to_smem %s14_s20, 16, %s695_s0, [#allocation2] }
  0x16   :  { %644 = dma.done.wait [#allocation2], 32 }
  0x17   :  { %645 = vsyncadd [#allocation2], 4294967264 }
  0x18   :  { %18 = sfence }
  0x19   :  { %19 = vsyncpa [#allocation6], 0 }
  0x1a   :  { %21 = vsyncpa [#allocation6 + $0x1], 0  ;;  %s731_s1 = smov 0   ;;  %s733_s24 = smov 0  }
  0x1b   :  { %s735_s25 = smov 0   ;;  %s737_s26 = smov 0  }
  0x1c   :  { %s739_s27 = smov 0   ;;  %s741_s28 = smov 0  }
  0x1d LB: > { %s413_s29 = sadd.s32 4294967295, %s672_s28   ;;  %s414_s30 = sadd.s32 4294967294, %s672_s28   ;;  %s672_s28 = sphi %s741_s28, %s27_s28   ;;  %s668_s27 = sphi %s739_s27, %s914_s27   ;;  %s664_s26 = sphi %s737_s26, %s913_s26   ;;  %s660_s25 = sphi %s735_s25, %s912_s25   ;;  %s656_s24 = sphi %s733_s24, %s911_s24   ;;  %s652_s1 = sphi %s731_s1, %s910_s1  }
  0x1e   : > { %s39_s5 = sadd.s32 1, %s668_s27  ;;  %s90_s6 = sadd.s32 1, %s660_s25 }
  0x1f   : > { %p41_p10 = scmp.ge.s32.totalorder %s39_s5, 2  ;;  %p100_p11 = scmp.ne.s32.totalorder %s660_s25, %s656_s24 }
  0x20   : > { %p101_p12 = scmp.eq.s32.totalorder %s413_s29, 1  ;;  %p106_p13 = scmp.ne.s32.totalorder %s656_s24, %s652_s1 }
  0x21   : > { %s916_s5 = smov (%p41_p10, %s39_s5), 0  ;;  %p107_p1 = scmp.eq.s32.totalorder %s414_s30, 1 }
  0x22   : > { %p771_p0 = por %p101_p12, %p100_p11  ;;  %s85_s8 = ssub.s32 %s668_s27, %s916_s5 }
  0x23   : > { %p416_p2 = scmp.ge.s32.totalorder %s672_s28, 1  ;;  %p88_p3 = scmp.eq.s32.totalorder %s85_s8, 0 }
  0x24   : > { %p778_p4 = por %p107_p1, %p106_p13  ;;  %p131_p5 = scmp.lt.s32.totalorder %s672_s28, 3 }
  0x25   : > { %s784_s10 = scalar_select %p88_p3, %s660_s25, %s90_s6  }
  0x26   : > { %p132_p6 = pnand %p416_p2, %p131_p5 }
  0x27   : > { %s145_s11 = sand.u32 (!%p132_p6), 1, %s656_s24   ;;  %s418_s12 = sshll.u32 (!%p132_p6), %s664_s26, 8  ;;  %v154_v0 = vlaneseq (!%p132_p6)  ;;  %v804_v6 = vmov (!%p132_p6), 0.0   ;;  %v806_v7 = vmov (!%p132_p6), 0.0  }
  0x28   : > { %135 = sbr.rel (%p132_p6) target bundleno = 447 (0x1bf), region = 28  ;;  %s417_s13 = sshll.u32 (!%p132_p6), %s145_s11, 2  ;;  %v157_v1 = vstv (!%p132_p6), %s418_s12 }
  0x29   : > { %s791_s14 = sld [smem:[#allocation3 + %s664_s26]] (!%p132_p6)  ;;  %v155_v2 = vand.u32 (!%p132_p6), 127, %v154_v0  ;;  %s801_s16 = scalar_lea.vmem (!%p132_p6), [#allocation5], %s417_s13 }
  0x2a   : > { %s795_s15 = sld [smem:[#allocation4 + %s664_s26]] (!%p132_p6) }
  0x2b   : > { %v156_v3 = vadd.s32 (!%p132_p6), 128, %v155_v2  ;;  %v797_v4 = vadd.s32 (!%p132_p6), %v157_v1, %v155_v2 }
  0x2d   : > { %v799_v5 = vadd.s32 (!%p132_p6), %v157_v1, %v156_v3 }
  0x30   : > { %p419_p7 = scmp.le.s32.totalorder %s795_s15, 0 }
  0x31   : > { %v674_v8 = vmov (!%p419_p7), 0.0   ;;  %v678_v9 = vmov (!%p419_p7), 0.0   ;;  %s808_s17 = smov (!%p419_p7), 0  }
  0x32   : > { %383 = sbr.rel (%p419_p7) target bundleno = 420 (0x1a4), region = 64 }
  0x39 LB: >> { %v696_v10 = vmov 0   ;;  %s815_s18 = sadd.s32 %s684_s17, %s791_s14  ;;  %v697_v19 = vmov 1.0|1.0   ;;  %vm220_vm12 = vcmask 261120   ;;  %s165_s17 = sadd.s32 1, %s684_s17   ;;  %s684_s17 = sphi %s808_s17, %s165_s17   ;;  %v680_v9 = vphi %v678_v9, %v679_v9   ;;  %v676_v8 = vphi %v674_v8, %v675_v8  }
  0x3a   : >> { %547 = vset.pattern.permute.xlu1 %v696_v10  ;;  %546 = vset.pattern.permute.xlu0 %v696_v10  ;;  %s420_s19 = sshll.u32 %s815_s18, 5  ;;  %s429_s23 = sshll.u32 %s815_s18, 1 }
  0x3b   : >> { %256 = vmatprep.mubr.bf16.mxu0 %v696_v10  ;;  %s172_s22 = scalar_lea.vmem %s902_s2, %s420_s19  ;;  %s218_s30 = scalar_lea.vmem %s903_s3, %s429_s23 }
  0x3c   : >> { %v175_v11 = vld [vmem:[%s172_s22 + $0x10] sm:$0xff]  ;;  %v173_v12 = vld [vmem:[%s172_s22] sm:$0xff]  ;;  %v176_v13 = vld [vmem:[%s172_s22 + $0x18] sm:$0xff]  ;;  %p164_p8 = scmp.ge.s32.totalorder %s165_s17, %s795_s15 }
  0x3d   : >> { %184 = vperm.xlu1 %547, %v175_v11   ;;  %178 = vperm.xlu0 %546, %v173_v12   ;;  %v174_v14 = vld [vmem:[%s172_s22 + $0x8] sm:$0xff]  ;;  %v219_v20 = vld [vmem:[%s218_s30] sm:$0x3] }
  0x41   : >> { %187 = vperm.xlu1 %547, %v176_v13   ;;  %181 = vperm.xlu0 %546, %v174_v14  }
  0xbc   : >> { %v185_v15 = vpop.permute.xlu1 %184  ;;  %v179_v16 = vpop.permute.xlu0 %178 }
  0xbd   : >> { %vm189_vm2 = vcmp.eq.s32.totalorder %v179_v16, %v797_v4  ;;  %vm194_vm3 = vcmp.eq.s32.totalorder %v185_v15, %v799_v5  ;;  %vm190_vm6 = vcmp.eq.s32.totalorder %v179_v16, %v799_v5  ;;  %vm193_vm8 = vcmp.eq.s32.totalorder %v185_v15, %v797_v4 }
  0xc0   : >> { %v182_v17 = vpop.permute.xlu0 %181  ;;  %v188_v18 = vpop.permute.xlu1 %187 }
  0xc1   : >> { %vm191_vm0 = vcmp.eq.s32.totalorder %v182_v17, %v797_v4  ;;  %vm192_vm1 = vcmp.eq.s32.totalorder %v182_v17, %v799_v5  ;;  %vm196_vm4 = vcmp.eq.s32.totalorder %v188_v18, %v799_v5  ;;  %vm195_vm9 = vcmp.eq.s32.totalorder %v188_v18, %v797_v4 }
  0xc2   : >> { %vm432_vm5 = vmpackc.low %vm191_vm0, %vm189_vm2 }
  0xc3   : >> { %vm430_vm7 = vmpackc.low %vm192_vm1, %vm190_vm6 }
  0xc4   : >> { %431 = vmatprep.subr.msk.bf16.mxu0 %vm430_vm7, %v697_v19  ;;  %vm434_vm10 = vmpackc.low %vm196_vm4, %vm194_vm3 }
  0xc5   : >> { %433 = vmatpush1.bf16.msk.msra.mxu0 %vm432_vm5, %v697_v19  ;;  %vm436_vm11 = vmpackc.low %vm195_vm9, %vm193_vm8 }
  0xc6   : >> { %435 = vmatprep.subr.msk.bf16.mxu0 %vm434_vm10, %v697_v19 }
  0xc9   : >> { %437 = vmatpush1.bf16.msk.msra.mxu0 %vm436_vm11, %v697_v19 }
  0xcc   : >> { %438 = vmatmul.mubr.msk.bf16.vlgmr.msra.gmra.mrb[0].mxu0 %vm220_vm12, %v219_v20 }
 0x19d   : > { %167 = sbr.rel (!%p164_p8) target bundleno = 57 (0x39), region = 70 }
 0x19f   : >> { %v258_v21 = vpop.f32.mrb[0].mxu0 }
 0x1a0   : >> { %v265_v22 = vadd.f32 %v680_v9, %v258_v21   ;;  %v260_v23 = vpop.f32.mrb[1].mxu0 }
 0x1a1   : >> { %v266_v24 = vadd.f32 %v676_v8, %v260_v23   ;;  %v262_v25 = vpop.f32.mrb[2].mxu0 }
 0x1a2   : >> { %v263_v26 = vpop.f32.mrb[3].mxu0  ;;  %v679_v9 = vmov %v265_v22   ;;  %v909_v7 = vmov (%p164_p8), %v265_v22 }
 0x1a3   : >> { %v675_v8 = vmov %v266_v24   ;;  %v908_v6 = vmov (%p164_p8), %v266_v24 }
 0x1a4 PF: > { %v267_v27 = vmin.f32 %v692_v7, 1.0  ;;  %v268_v28 = vmin.f32 %v688_v6, 1.0  ;;  %v698_v29 = vmov 1966171168   ;;  %v276_v31 = vshrl.u32 %v154_v0, 7  ;;  %s445_s6 = sshll.u32 %s664_s26, 6  ;;  %v692_v7 = vphi %v806_v7, %v909_v7   ;;  %v688_v6 = vphi %v804_v6, %v908_v6  }
 0x1a5   : > { %v273_v30 = vunpack.c.l.s4 %v698_v29  ;;  %v294_v32 = vrot.slane %v692_v7, 1  ;;  %v295_v33 = vrot.slane %v688_v6, 1  ;;  %vm289_vm13 = vcmp.lt.s32.totalorder %v154_v0, 256  ;;  %s338_s8 = sshll.u32 %s801_s16, 4  ;;  %s851_s14 = scalar_lea.hbm %s904_s4, %s445_s6  ;;  %s853_s8 = int_to_ptr.vmem [resolvable:$true] %s338_s8 }
 0x1a6   : > { %v271_v34 = vcombine.low %v267_v27, %v268_v28  ;;  %s322_s15 = scalar_lea.sflag [#allocation6], %s145_s11  ;;  %s572_s17 = scalar_lea.vmem %s853_s8, 64 }
 0x1a7   : > { %v274_v35 = vunpack.c.0.s8 %v273_v30  ;;  %v298_v36 = vadd.f32 %v692_v7, %v294_v32  ;;  %v299_v37 = vadd.f32 %v688_v6, %v295_v33  ;;  %p573_p9 = scmp.ne.s32.totalorder %s853_s8, %s572_s17  ;;  %s699_s26 = smov [#allocation5]  }
 0x1a8   : > { %s576_s18 = sshll.u32 %s699_s26, 4  ;;  %s577_s18 = int_to_ptr.vmem [resolvable:$false] %s576_s18 }
 0x1a9   : > { %v277_v38 = vsub.s32 %v274_v35, %v276_v31  ;;  %v302_v39 = vcombine.low %v298_v36, %v299_v37  ;;  %p574_p10 = pnand %p573_p9, %p771_p0  ;;  %s578_s19 = scalar_lea.vmem %s577_s18, 128 }
 0x1aa   : > { %p579_p12 = scmp.lt.s32.totalorder %s853_s8, %s577_s18  ;;  %p580_p13 = scmp.lt.s32.totalorder %s578_s19, %s572_s17 }
 0x1ab   : > { %v278_v40 = vrot.slane %v271_v34, %v277_v38  ;;  %v309_v41 = vrot.slane %v302_v39, %v277_v38  ;;  %p575_p11 = pneg %p574_p10 }
 0x1ac   : > { %p581_p1 = por %p580_p13, %p579_p12 }
 0x1ad   : > { %v285_v42 = vrot.slane %v278_v40, %v277_v38  ;;  %v310_v43 = vcombine.high %v309_v41, %v309_v41 }
 0x1ae   : > { %p582_p2 = pnand %p581_p1, %p575_p11 }
 0x1af   : > { %291 = vst.msk [vmem:[%s801_s16] ss:$2 sm:$0x3] %vm289_vm13, %v285_v42  ;;  %v317_v44 = vrot.slane %v310_v43, %v277_v38 }
 0x1b1   : > { %439 = vst.msk [vmem:[%s801_s16 + $0x1] ss:$2 sm:$0x3] %vm289_vm13, %v317_v44 }
 0x1b2   : > { %585 = shalt.err (!%p582_p2)
}
 0x1b3   : > { %s586_s11 = scalar_lea.hbm %s851_s14, 64  ;;  %s590_s21 = scalar_lea.hbm %s904_s4, 128 }
 0x1b4   : > { %p587_p3 = scmp.ne.s32.totalorder %s851_s14, %s586_s11  ;;  %p591_p7 = scmp.lt.u32.totalorder %s851_s14, %s904_s4 }
 0x1b5   : > { %p592_p8 = scmp.lt.u32.totalorder %s590_s21, %s586_s11  ;;  %p594_p10 = scmp.lt.u32.totalorder %s586_s11, %s851_s14 }
 0x1b6   : > { %p588_p5 = pnand %p587_p3, %p771_p0 }
 0x1b7   : > { %p593_p9 = por %p592_p8, %p591_p7 }
 0x1b8   : > { %p589_p6 = pneg %p588_p5 }
 0x1b9   : > { %p595_p11 = por %p594_p10, %p593_p9 }
 0x1bb   : > { %p596_p12 = pnand %p595_p11, %p589_p6 }
 0x1bd   : > { %599 = shalt.err (!%p596_p12)
}
 0x1be   : > { %446 = dma.vmem_to_hbm [thread:$0]  (%p771_p0), %s853_s8, 64, %s851_s14, %s322_s15  }
 0x1bf PF: > { %p452_p13 = scmp.ge.s32.totalorder %s672_s28, 2  ;;  %s350_s0 = sand.u32 1, %s652_s1  }
 0x1c0   : > { %s351_s29 = scalar_lea.sflag [#allocation6], %s350_s0 }
 0x1c1   : > { %p449_p1 = pnand %p452_p13, %p778_p4 }
 0x1c3   : > { %647 = dma.done.wait (!%p449_p1), %s351_s29, 64  }
 0x1c4   : > { %649 = vsyncadd (!%p449_p1), %s351_s29, 4294967232  ;;  %s27_s28 = sadd.s32 1, %s672_s28   ;;  %s910_s1 = smov %s656_s24 }
 0x1c5   : > { %p24_p2 = scmp.ge.s32.totalorder %s27_s28, 4   ;;  %s911_s24 = smov %s660_s25 }
 0x1c6   : > { %s912_s25 = smov %s784_s10  ;;  %s913_s26 = smov %s668_s27 }
 0x1c7   : > { %s914_s27 = smov %s916_s5  ;;  %26 = sbr.rel (!%p24_p2) target bundleno = 29 (0x1d), region = 81 }
 0x1ce   :  { %356 = vsyncpa [#allocation6], 1 }
 0x1cf   :  { %358 = vsyncpa [#allocation6 + $0x1], 1 }

</bundles_post_ra>
